<compile_context>
chip_gen: v7x
topology: tpu7x:2x2x1
jax: 0.10.0
libtpu: 0.0.40
codegen_flags: <defaults>
</compile_context>

<pallas_src>
import jax
import jax.numpy as jnp
from jax.experimental import pallas as pl
from jax.experimental.pallas import tpu as pltpu


def _drop_path_kernel(x_ref, scale_ref, o_ref):
    # x_ref:     (TB, TF)  activation tile
    # scale_ref: (TB, 1)   per-row scale = mask / keep_prob (0.0 or 1/keep_prob)
    # o_ref:     (TB, TF)
    o_ref[...] = (x_ref[...] * scale_ref[...]).astype(o_ref.dtype)


def _round_up(x, m):
    return -(-x // m) * m


def _tpu_core_count():
    """Best-effort TensorCore count (v7x has 2); defaults to 1."""
    try:
        info = pltpu.get_tpu_info()
    except Exception:
        return 1
    for name in ("num_tensorcores", "tensorcore_count", "num_cores", "cores_per_chip"):
        v = getattr(info, name, None)
        if isinstance(v, int) and v > 0:
            return int(v)
    return 1


def _pick_slab_width(B, F, sub, max_width=8192):
    """Largest multiple-of-128 divisor of F (capped) keeping >= `sub` rows."""
    if F % 128 != 0:
        return None
    cands = [w for w in range(128, min(F, max_width) + 1, 128) if F % w == 0]
    if not cands:
        return None
    good = [w for w in cands if (B * F) // w >= sub]
    return max(good) if good else max(cands)


def _select_tiles(n_rows, n_cols, itemsize, num_cores,
                  tile_budget_bytes=4 * 1024 * 1024):
    """Pick a (tb, tf) block shape for streaming a (n_rows, n_cols) array."""
    sub = max(8, 32 // itemsize)          # sublane pack: 8 f32 / 16 bf16 / 32 i8
    lane = 128

    # Lane (last) dim: multiple of 128 (ragged last block is masked) or the
    # full dim -- both satisfy the (8,128) BlockSpec rule.  Never below 128.
    if n_cols <= lane:
        tf = n_cols
    else:
        tf = min(_round_up(n_cols, lane), 2048)
        if tf >= n_cols:
            tf = n_cols

    # Sublane (second-last) dim from the VMEM budget: ~4x the input tile is in
    # flight (double-buffered input + output).
    if n_rows <= sub:
        tb = n_rows
    else:
        tb = max(sub, (tile_budget_bytes // (tf * itemsize)) // sub * sub)
        # Keep enough grid steps for DMA/compute overlap (>=2 per TensorCore).
        min_steps = 4 if num_cores >= 2 else 2
        col_steps = -(-n_cols // tf)
        want_row_steps = max(1, -(-min_steps // col_steps))
        if want_row_steps > 1:
            cap = (n_rows // want_row_steps) // sub * sub
            if cap >= sub:
                tb = min(tb, cap)
        if tb >= n_rows:
            tb = n_rows                    # single row-step: full dim is legal
    return tb, tf


def drop_path_forward(x, *, drop_prob=0.0, training=False, key=None):
    """DropPath forward. x: (B, ...). Returns an array of the same shape."""
    if drop_prob == 0.0 or not training:
        return x
    if key is None:
        key = jax.random.PRNGKey(0)

    keep_prob = 1.0 - float(drop_prob)
    orig_shape = x.shape
    B = int(x.shape[0])
    F = 1
    for d in x.shape[1:]:
        F *= int(d)
    itemsize = jnp.dtype(x.dtype).itemsize
    sub = max(8, 32 // itemsize)
    num_cores = _tpu_core_count()

    # Per-sample Bernoulli(keep_prob) mask exactly as in the PyTorch code:
    # floor(keep_prob + U[0,1)); fold 1/keep_prob into it (0.0 or 1/keep_prob).
    u = jax.random.uniform(key, (B, 1), dtype=jnp.float32)
    scale = jnp.floor(keep_prob + u) / keep_prob                  # (B, 1), f32

    # Choose the 2-D streaming view (free reshapes, no pad / no output slice).
    lw = _pick_slab_width(B, F, sub) if B < sub else None
    if lw is not None and F // lw > 1:
        # Small batch: tall-slab view so every vreg sublane carries data;
        # expand scale to per-row (tiny compared with x traffic).
        rows_per = F // lw
        n_rows, n_cols = B * rows_per, lw
        x2 = x.reshape(n_rows, n_cols)
        scale2 = jnp.broadcast_to(
            scale[:, None, :], (B, rows_per, 1)).reshape(n_rows, 1)
    else:
        n_rows, n_cols = B, F
        x2 = x.reshape(n_rows, n_cols)
        scale2 = scale

    tb, tf = _select_tiles(n_rows, n_cols, itemsize, num_cores)
    grid = (pl.cdiv(n_rows, tb), pl.cdiv(n_cols, tf))

    tile_bytes = tb * tf * itemsize
    vmem_limit = int(min(max(6 * tile_bytes + (1 << 20), 16 << 20), 32 << 20))
    bytes_accessed = 2 * B * F * itemsize + n_rows * 4

    out = pl.pallas_call(
        _drop_path_kernel,
        out_shape=jax.ShapeDtypeStruct((n_rows, n_cols), x.dtype),
        grid_spec=pl.GridSpec(
            grid=grid,
            in_specs=[
                pl.BlockSpec((tb, tf), lambda i, j: (i, j)),   # activation tile
                pl.BlockSpec((tb, 1), lambda i, j: (i, 0)),    # per-row scale
            ],
            out_specs=pl.BlockSpec((tb, tf), lambda i, j: (i, j)),
        ),
        compiler_params=pltpu.CompilerParams(
            dimension_semantics=("parallel", "parallel"),
            vmem_limit_bytes=vmem_limit,
        ),
        cost_estimate=pl.CostEstimate(
            flops=B * F,
            transcendentals=0,
            bytes_accessed=int(bytes_accessed),
        ),
    )(x2, scale2)

    return out.reshape(orig_shape)


if __name__ == "__main__":
    drop_prob = 0.25
    keep_prob = 1.0 - drop_prob

    key = jax.random.PRNGKey(0)
    kx, km, kx2, km2 = jax.random.split(key, 4)

    # Shape consistent with how DropPath is used in the model: (B, C, H, W).
    x = jax.random.normal(kx, (2, 4, 16, 16), dtype=jnp.float32)

    # Identity paths (drop_prob == 0, or eval mode) -- no kernel launched.
    assert drop_path_forward(x, drop_prob=0.0, training=True, key=km) is x
    assert drop_path_forward(x, drop_prob=drop_prob, training=False, key=km) is x

    # Training path (slab tiling: F = 1024 is a multiple of 128, B = 2 < 8).
    out = jax.block_until_ready(
        drop_path_forward(x, drop_prob=drop_prob, training=True, key=km))
    assert out.shape == x.shape, out.shape
    u = jax.random.uniform(km, (2, 1), dtype=jnp.float32)
    ref = x * (jnp.floor(keep_prob + u) / keep_prob).reshape(2, 1, 1, 1)
    assert jnp.allclose(out, ref, atol=1e-6, rtol=1e-6)

    # Non-128-aligned feature count (F = 300) exercises the cdiv / masked-tile
    # path with no padding round-trip.
    x2 = jax.random.normal(kx2, (2, 3, 10, 10), dtype=jnp.float32)
    out2 = jax.block_until_ready(
        drop_path_forward(x2, drop_prob=drop_prob, training=True, key=km2))
    assert out2.shape == x2.shape, out2.shape
    u2 = jax.random.uniform(km2, (2, 1), dtype=jnp.float32)
    ref2 = x2 * (jnp.floor(keep_prob + u2) / keep_prob).reshape(2, 1, 1, 1)
    assert jnp.allclose(out2, ref2, atol=1e-6, rtol=1e-6)

    print("KERNEL_OK")
</pallas_src>

<mosaic_0001>
module attributes {stable_mosaic.version = 11 : i64} {
  func.func @_drop_path_kernel(%arg0: i32, %arg1: i32, %arg2: memref<8x256xf32, #tpu.memory_space<vmem>>, %arg3: memref<8x1xf32, #tpu.memory_space<vmem>>, %arg4: memref<8x256xf32, #tpu.memory_space<vmem>>) attributes {dimension_semantics = [#tpu.dimension_semantics<parallel>, #tpu.dimension_semantics<parallel>], iteration_bounds = array<i64: 1, 1>, scalar_prefetch = 0 : i64, scratch_operands = 0 : i64, tpu.core_type = #tpu.core_type<tc>, window_params = [{transform_indices = @transform_0, window_bounds = array<i64: 8, 256>}, {transform_indices = @transform_1, window_bounds = array<i64: 8, 1>}, {transform_indices = @transform_2, window_bounds = array<i64: 8, 256>}]} {
    %c0 = arith.constant 0 : index
    %c0_0 = arith.constant 0 : index
    %0 = vector.load %arg2[%c0, %c0_0] : memref<8x256xf32, #tpu.memory_space<vmem>>, vector<8x256xf32>
    %c0_1 = arith.constant 0 : index
    %c0_2 = arith.constant 0 : index
    %1 = vector.load %arg3[%c0_1, %c0_2] : memref<8x1xf32, #tpu.memory_space<vmem>>, vector<8x1xf32>
    %2 = vector.broadcast %1 : vector<8x1xf32> to vector<8x256xf32>
    %3 = arith.mulf %0, %2 : vector<8x256xf32>
    %c0_3 = arith.constant 0 : index
    %c0_4 = arith.constant 0 : index
    %4 = vector.load %arg4[%c0_3, %c0_4] : memref<8x256xf32, #tpu.memory_space<vmem>>, vector<8x256xf32>
    tpu.vector_store %arg4[%c0_3, %c0_4], %3 {strides = array<i32>} : memref<8x256xf32, #tpu.memory_space<vmem>>, vector<8x256xf32>,
    return
  }
  func.func @transform_0(%arg0: i32, %arg1: i32) -> (i32, i32) {
    %c0_i32 = arith.constant 0 : i32
    return %arg0, %arg1 : i32, i32
  }
  func.func @transform_1(%arg0: i32, %arg1: i32) -> (i32, i32) {
    %c0_i32 = arith.constant 0 : i32
    %c0_i32_0 = arith.constant 0 : i32
    return %arg0, %c0_i32 : i32, i32
  }
  func.func @transform_2(%arg0: i32, %arg1: i32) -> (i32, i32) {
    %c0_i32 = arith.constant 0 : i32
    return %arg0, %arg1 : i32, i32
  }
}

</mosaic_0001>

<bundles_post_ra>
// kernel: tpu_custom_call.1
= control target key start
LH: loop header
LB: loop body
LE: loop exit
PB: predicated region body
PF: predicated region fallthrough
CT: control target
= control target key end

     0   :  { %7 = vsyncpa [#allocation3], 0  ;;  %s148_s0 = inlined_call_operand.hbm [shape: f32[8,256], index: 0, kind: input, shape index: {}]   ;;  %s149_s1 = inlined_call_operand.vmem [shape: f32[8,1], index: 1, kind: input, shape index: {}]   ;;  %s150_s2 = inlined_call_operand.hbm [shape: f32[8,256], index: 2, kind: output, shape index: {}]  }
   0x1   :  { %8 = vsyncpa [#allocation4], 0  ;;  %s103_s9 = smov [#allocation2]   ;;  %s55_s13 = scalar_lea.hbm %s148_s0, 256 }
   0x2   :  { %s15_s10 = sshll.u32 %s103_s9, 4  ;;  %p56_p0 = scmp.ne.s32.totalorder %s148_s0, %s55_s13  ;;  %s16_s10 = int_to_ptr.vmem [resolvable:$true] %s15_s10 }
   0x3   :  { %p59_p1 = scmp.lt.u32.totalorder %s55_s13, %s148_s0 }
   0x5   :  { %p61_p2 = pnand %p59_p1, %p56_p0 }
   0x7   :  { %64 = shalt.err (!%p61_p2)
}
   0x8   :  { %s65_s18 = scalar_lea.vmem %s16_s10, 256  ;;  %p70_p4 = scmp.lt.s32.totalorder %s16_s10, %s16_s10 }
   0x9   :  { %p66_p3 = scmp.ne.s32.totalorder %s16_s10, %s65_s18  ;;  %p71_p5 = scmp.lt.s32.totalorder %s65_s18, %s65_s18 }
   0xb   :  { %p72_p6 = por %p71_p5, %p70_p4 }
   0xd   :  { %p73_p7 = pnand %p72_p6, %p66_p3 }
   0xf   :  { %76 = shalt.err (!%p73_p7)
}
  0x10   :  { %18 = dma.hbm_to_vmem [thread:$0]  %s148_s0, 256, %s16_s10, [#allocation3]  }
  0x11   :  { %99 = dma.done.wait [#allocation3], 256  }
  0x12   :  { %100 = vsyncadd [#allocation3], 4294967040  ;;  %v104_v0 = vmov 0   ;;  %v26_v1 = vld [vmem:[%s149_s1] sm:$0xff]  ;;  %v25_v3 = vld [vmem:[#allocation2 + $0x8] sm:$0xff]  ;;  %s105_s23 = smov [#allocation5]  }
  0x13   :  { %54 = vset.pattern.permute.xlu0 %v104_v0  ;;  %v24_v2 = vld [vmem:[#allocation2] sm:$0xff]  ;;  %s42_s24 = sshll.u32 %s105_s23, 4  ;;  %s43_s24 = int_to_ptr.vmem [resolvable:$true] %s42_s24 }
  0x14   :  { %29 = vperm.xlu0 %54, %v26_v1   ;;  %s77_s0 = scalar_lea.vmem %s43_s24, 256  ;;  %p82_p9 = scmp.lt.s32.totalorder %s43_s24, %s43_s24 }
  0x15   :  { %p78_p8 = scmp.ne.s32.totalorder %s43_s24, %s77_s0  ;;  %p83_p10 = scmp.lt.s32.totalorder %s77_s0, %s77_s0 }
  0x17   :  { %p84_p11 = por %p83_p10, %p82_p9 }
  0x19   :  { %p85_p12 = pnand %p84_p11, %p78_p8 }
  0x93   :  { %v30_v4 = vpop.permute.xlu0 %29 }
  0x94   :  { %v32_v5 = vmul.f32 %v30_v4, %v24_v2  ;;  %v33_v6 = vmul.f32 %v30_v4, %v25_v3 }
  0x96   :  { %34 = vst [vmem:[#allocation5] sm:$0xff] %v32_v5  ;;  %35 = vst [vmem:[#allocation5 + $0x8] sm:$0xff] %v33_v6 }
  0x97   :  { %88 = shalt.err (!%p85_p12)
}
  0x98   :  { %s89_s26 = scalar_lea.hbm %s150_s2, 256 }
  0x99   :  { %p90_p13 = scmp.ne.s32.totalorder %s150_s2, %s89_s26  ;;  %p93_p0 = scmp.lt.u32.totalorder %s89_s26, %s150_s2 }
  0x9b   :  { %p95_p1 = pnand %p93_p0, %p90_p13 }
  0x9d   :  { %98 = shalt.err (!%p95_p1)
}
  0x9e   :  { %45 = dma.vmem_to_hbm [thread:$0]  %s43_s24, 256, %s150_s2, [#allocation4]  }
  0x9f   :  { %101 = dma.done.wait [#allocation4], 256  }
  0xa0   :  { %102 = vsyncadd [#allocation4], 4294967040 }
  0xa1   :  { %49 = vsyncpa [#allocation3], 1 }
  0xa2   :  { %50 = vsyncpa [#allocation4], 1 }

</bundles_post_ra>
